<compile_context>
chip_gen: v5e
topology: v5e:2x2
jax: 0.10.0
libtpu: 0.0.40
codegen_flags: <defaults>
</compile_context>

<pallas_src>
import functools

import jax
import jax.numpy as jnp
from jax.experimental import pallas as pl
from jax.experimental.pallas import tpu as pltpu


def _bn_onepass_kernel(x_ref, w_ref, b_ref, rm_ref, rv_ref,
                       y_ref, nrm_ref, nrv_ref, *, eps, momentum):
    # x_ref: (N, TC, M)  — full per-channel rows resident in VMEM.
    # w/b/rm/rv refs: (TC, 1)
    x = x_ref[...].astype(jnp.float32)
    n, tc, m = x.shape
    cnt = n * m

    # one-pass statistics: sum and sum of squares
    s = jnp.sum(x, axis=2, keepdims=True)        # (N, TC, 1)
    ss = jnp.sum(x * x, axis=2, keepdims=True)   # (N, TC, 1)
    s = jnp.sum(s, axis=0)                       # (TC, 1)
    ss = jnp.sum(ss, axis=0)                     # (TC, 1)

    mean = s / cnt
    var = jnp.maximum(ss / cnt - mean * mean, 0.0)   # biased variance, clamped
    inv_std = jax.lax.rsqrt(var + eps)

    scale = w_ref[...] * inv_std                     # (TC, 1)
    shift = b_ref[...] - mean * scale                # (TC, 1)
    y = x * scale[None, :, :] + shift[None, :, :]
    y_ref[...] = y.astype(y_ref.dtype)

    # running stats (PyTorch uses the unbiased variance here)
    bessel = cnt / max(cnt - 1, 1)
    nrm_ref[...] = (1.0 - momentum) * rm_ref[...] + momentum * mean
    nrv_ref[...] = (1.0 - momentum) * rv_ref[...] + momentum * (var * bessel)


def _bn_twophase_kernel(x_ref, w_ref, b_ref, rm_ref, rv_ref,
                        y_ref, nrm_ref, nrv_ref,
                        sum_scr, sq_scr, scale_scr, shift_scr,
                        *, eps, momentum, km, count):
    # grid = (C_blocks, 2*km): j in [0, km) accumulates stats,
    # j in [km, 2*km) re-reads x blocks and writes normalized y.
    j = pl.program_id(1)

    @pl.when(j == 0)
    def _():
        sum_scr[...] = jnp.zeros_like(sum_scr)
        sq_scr[...] = jnp.zeros_like(sq_scr)

    @pl.when(j < km)
    def _():
        x = x_ref[...].astype(jnp.float32)
        ps = jnp.sum(x, axis=2, keepdims=True)       # (N, TC, 1)
        pss = jnp.sum(x * x, axis=2, keepdims=True)  # (N, TC, 1)
        sum_scr[...] += jnp.sum(ps, axis=0)
        sq_scr[...] += jnp.sum(pss, axis=0)

    @pl.when(j == km)
    def _():
        mean = sum_scr[...] / count
        var = jnp.maximum(sq_scr[...] / count - mean * mean, 0.0)
        inv_std = jax.lax.rsqrt(var + eps)
        scale = w_ref[...] * inv_std
        shift = b_ref[...] - mean * scale
        scale_scr[...] = scale
        shift_scr[...] = shift
        bessel = count / max(count - 1, 1)
        nrm_ref[...] = (1.0 - momentum) * rm_ref[...] + momentum * mean
        nrv_ref[...] = (1.0 - momentum) * rv_ref[...] + momentum * (var * bessel)

    @pl.when(j >= km)
    def _():
        x = x_ref[...].astype(jnp.float32)
        y = x * scale_scr[...][None, :, :] + shift_scr[...][None, :, :]
        y_ref[...] = y.astype(y_ref.dtype)


def batch_norm_pallas(x_nchw, weight, bias, running_mean, running_var,
                      eps=1e-5, momentum=0.1, max_tile_bytes=2 * 1024 * 1024):
    n, c, h, w = x_nchw.shape
    m = h * w
    count = n * m

    # NCHW -> (N, C, H*W): pure reshape, no data movement.
    x3 = x_nchw.reshape(n, c, m)

    # per-channel params as (C, 1) columns (tiny; kept sublane-major so they
    # tile naturally with the channel grid axis).
    w2 = weight.reshape(c, 1).astype(jnp.float32)
    b2 = bias.reshape(c, 1).astype(jnp.float32)
    rm2 = running_mean.reshape(c, 1).astype(jnp.float32)
    rv2 = running_var.reshape(c, 1).astype(jnp.float32)

    itemsize = jnp.dtype(x_nchw.dtype).itemsize
    sub = {4: 8, 2: 16, 1: 32}.get(itemsize, 8)

    def fits(tc_, mb_):
        # one x tile; double-buffered in + out tiles => ~4x this, kept well
        # under the default scoped VMEM (16 MiB v5e, 32 MiB v6e/v7x).
        return n * tc_ * mb_ * itemsize <= max_tile_bytes

    # channel tile: multiple of the sublane packing if possible, else full C.
    if c % sub == 0:
        tc = sub
        while c % (tc * 2) == 0 and fits(tc * 2, m):
            tc *= 2
    else:
        tc = c

    # spatial (lane) tiling
    if fits(tc, m):
        km, mb = 1, m
    elif m % 128 == 0:
        mdiv = m // 128
        km = mdiv
        for cand in range(2, mdiv + 1):
            if mdiv % cand == 0 and fits(tc, m // cand):
                km = cand
                break
        mb = m // km
    else:
        # TODO(synk): pad H*W to a multiple of 128 when a non-128-divisible
        # row is too large for VMEM; fall back to a single full-row block.
        km, mb = 1, m

    cblocks = c // tc

    out_shapes = (
        jax.ShapeDtypeStruct((n, c, m), x_nchw.dtype),
        jax.ShapeDtypeStruct((c, 1), jnp.float32),
        jax.ShapeDtypeStruct((c, 1), jnp.float32),
    )

    if km == 1:
        kernel = functools.partial(_bn_onepass_kernel, eps=eps, momentum=momentum)
        y3, nrm, nrv = pl.pallas_call(
            kernel,
            out_shape=out_shapes,
            grid=(cblocks,),
            in_specs=[
                pl.BlockSpec((n, tc, m), lambda ci: (0, ci, 0)),
                pl.BlockSpec((tc, 1), lambda ci: (ci, 0)),
                pl.BlockSpec((tc, 1), lambda ci: (ci, 0)),
                pl.BlockSpec((tc, 1), lambda ci: (ci, 0)),
                pl.BlockSpec((tc, 1), lambda ci: (ci, 0)),
            ],
            out_specs=(
                pl.BlockSpec((n, tc, m), lambda ci: (0, ci, 0)),
                pl.BlockSpec((tc, 1), lambda ci: (ci, 0)),
                pl.BlockSpec((tc, 1), lambda ci: (ci, 0)),
            ),
            compiler_params=pltpu.CompilerParams(
                dimension_semantics=("parallel",)),
        )(x3, w2, b2, rm2, rv2)
    else:
        kernel = functools.partial(_bn_twophase_kernel, eps=eps,
                                   momentum=momentum, km=km, count=count)
        x_idx = lambda ci, j: (0, ci, jnp.where(j < km, j, j - km))
        y_idx = lambda ci, j: (0, ci, jnp.where(j < km, 0, j - km))
        p_idx = lambda ci, j: (ci, 0)
        y3, nrm, nrv = pl.pallas_call(
            kernel,
            out_shape=out_shapes,
            grid=(cblocks, 2 * km),
            in_specs=[
                pl.BlockSpec((n, tc, mb), x_idx),
                pl.BlockSpec((tc, 1), p_idx),
                pl.BlockSpec((tc, 1), p_idx),
                pl.BlockSpec((tc, 1), p_idx),
                pl.BlockSpec((tc, 1), p_idx),
            ],
            out_specs=(
                pl.BlockSpec((n, tc, mb), y_idx),
                pl.BlockSpec((tc, 1), p_idx),
                pl.BlockSpec((tc, 1), p_idx),
            ),
            scratch_shapes=[
                pltpu.VMEM((tc, 1), jnp.float32),   # sum
                pltpu.VMEM((tc, 1), jnp.float32),   # sum of squares
                pltpu.VMEM((tc, 1), jnp.float32),   # scale
                pltpu.VMEM((tc, 1), jnp.float32),   # shift
            ],
            compiler_params=pltpu.CompilerParams(
                dimension_semantics=("parallel", "arbitrary")),
        )(x3, w2, b2, rm2, rv2)

    # (N, C, H*W) -> NCHW: free reshape.
    y = y3.reshape(n, c, h, w)
    return y, nrm.reshape(c), nrv.reshape(c)


if __name__ == "__main__":
    key = jax.random.PRNGKey(0)
    kx, kw = jax.random.split(key)

    N, C, H, W = 2, 4, 16, 16
    x = jax.random.normal(kx, (N, C, H, W), dtype=jnp.float32)

    # deterministic init matching reset_parameters():
    #   weight ~ uniform_(), bias = 0, running_mean = 0, running_var = 1
    weight = jax.random.uniform(kw, (C,), dtype=jnp.float32)
    bias = jnp.zeros((C,), dtype=jnp.float32)
    running_mean = jnp.zeros((C,), dtype=jnp.float32)
    running_var = jnp.ones((C,), dtype=jnp.float32)

    eps, momentum = 1e-5, 0.1

    # reference (training-mode batch norm) in plain JAX
    mean_ref = jnp.mean(x, axis=(0, 2, 3))
    var_ref = jnp.var(x, axis=(0, 2, 3))
    y_ref = ((x - mean_ref[None, :, None, None]) /
             jnp.sqrt(var_ref[None, :, None, None] + eps)
             ) * weight[None, :, None, None] + bias[None, :, None, None]
    mcount = N * H * W
    rm_ref = (1 - momentum) * running_mean + momentum * mean_ref
    rv_ref = (1 - momentum) * running_var + momentum * var_ref * (mcount / (mcount - 1))

    # --- path 1: full per-channel rows fit the tile budget (single pass) ---
    y1, nrm1, nrv1 = batch_norm_pallas(
        x, weight, bias, running_mean, running_var, eps=eps, momentum=momentum)
    jax.block_until_ready((y1, nrm1, nrv1))
    assert jnp.allclose(y1, y_ref, atol=1e-4, rtol=1e-4)
    assert jnp.allclose(nrm1, rm_ref, atol=1e-4, rtol=1e-4)
    assert jnp.allclose(nrv1, rv_ref, atol=1e-4, rtol=1e-4)

    # --- path 2: force the two-phase (tiled reduction) path with a tiny budget ---
    y2, nrm2, nrv2 = batch_norm_pallas(
        x, weight, bias, running_mean, running_var, eps=eps, momentum=momentum,
        max_tile_bytes=4096)
    jax.block_until_ready((y2, nrm2, nrv2))
    assert jnp.allclose(y2, y_ref, atol=1e-4, rtol=1e-4)
    assert jnp.allclose(nrm2, rm_ref, atol=1e-4, rtol=1e-4)
    assert jnp.allclose(nrv2, rv_ref, atol=1e-4, rtol=1e-4)

    print("KERNEL_OK")
</pallas_src>

<mosaic_0001>
module attributes {stable_mosaic.version = 11 : i64} {
  func.func @_bn_onepass_kernel(%arg0: i32, %arg1: memref<2x4x256xf32, #tpu.memory_space<vmem>>, %arg2: memref<4x1xf32, #tpu.memory_space<vmem>>, %arg3: memref<4x1xf32, #tpu.memory_space<vmem>>, %arg4: memref<4x1xf32, #tpu.memory_space<vmem>>, %arg5: memref<4x1xf32, #tpu.memory_space<vmem>>, %arg6: memref<2x4x256xf32, #tpu.memory_space<vmem>>, %arg7: memref<4x1xf32, #tpu.memory_space<vmem>>, %arg8: memref<4x1xf32, #tpu.memory_space<vmem>>) attributes {dimension_semantics = [#tpu.dimension_semantics<parallel>], iteration_bounds = array<i64: 1>, scalar_prefetch = 0 : i64, scratch_operands = 0 : i64, tpu.core_type = #tpu.core_type<tc>, window_params = [{transform_indices = @transform_0, window_bounds = array<i64: 2, 4, 256>}, {transform_indices = @transform_1, window_bounds = array<i64: 4, 1>}, {transform_indices = @transform_2, window_bounds = array<i64: 4, 1>}, {transform_indices = @transform_3, window_bounds = array<i64: 4, 1>}, {transform_indices = @transform_4, window_bounds = array<i64: 4, 1>}, {transform_indices = @transform_5, window_bounds = array<i64: 2, 4, 256>}, {transform_indices = @transform_6, window_bounds = array<i64: 4, 1>}, {transform_indices = @transform_7, window_bounds = array<i64: 4, 1>}]} {
    %c0 = arith.constant 0 : index
    %c0_0 = arith.constant 0 : index
    %c0_1 = arith.constant 0 : index
    %0 = vector.load %arg1[%c0, %c0_0, %c0_1] : memref<2x4x256xf32, #tpu.memory_space<vmem>>, vector<2x4x256xf32>
    %cst = arith.constant dense<0.000000e+00> : vector<2x4xf32>
    %1 = vector.multi_reduction <add>, %0, %cst [2] : vector<2x4x256xf32> to vector<2x4xf32>
    %2 = vector.shape_cast %1 : vector<2x4xf32> to vector<2x4x1xf32>
    %3 = arith.mulf %0, %0 : vector<2x4x256xf32>
    %cst_2 = arith.constant dense<0.000000e+00> : vector<2x4xf32>
    %4 = vector.multi_reduction <add>, %3, %cst_2 [2] : vector<2x4x256xf32> to vector<2x4xf32>
    %5 = vector.shape_cast %4 : vector<2x4xf32> to vector<2x4x1xf32>
    %cst_3 = arith.constant dense<0.000000e+00> : vector<4x1xf32>
    %6 = vector.multi_reduction <add>, %2, %cst_3 [0] : vector<2x4x1xf32> to vector<4x1xf32>
    %cst_4 = arith.constant dense<0.000000e+00> : vector<4x1xf32>
    %7 = vector.multi_reduction <add>, %5, %cst_4 [0] : vector<2x4x1xf32> to vector<4x1xf32>
    %cst_5 = arith.constant 5.120000e+02 : f32
    %8 = vector.broadcast %cst_5 : f32 to vector<4x1xf32>
    %9 = arith.divf %6, %8 : vector<4x1xf32>
    %cst_6 = arith.constant 5.120000e+02 : f32
    %10 = vector.broadcast %cst_6 : f32 to vector<4x1xf32>
    %11 = arith.divf %7, %10 : vector<4x1xf32>
    %12 = arith.mulf %9, %9 : vector<4x1xf32>
    %13 = arith.subf %11, %12 : vector<4x1xf32>
    %cst_7 = arith.constant 0.000000e+00 : f32
    %14 = vector.broadcast %cst_7 : f32 to vector<4x1xf32>
    %15 = arith.maximumf %13, %14 : vector<4x1xf32>
    %cst_8 = arith.constant 9.99999974E-6 : f32
    %16 = vector.broadcast %cst_8 : f32 to vector<4x1xf32>
    %17 = arith.addf %15, %16 : vector<4x1xf32>
    %18 = math.rsqrt %17 : vector<4x1xf32>
    %c0_9 = arith.constant 0 : index
    %c0_10 = arith.constant 0 : index
    %19 = vector.load %arg2[%c0_9, %c0_10] : memref<4x1xf32, #tpu.memory_space<vmem>>, vector<4x1xf32>
    %20 = arith.mulf %19, %18 : vector<4x1xf32>
    %c0_11 = arith.constant 0 : index
    %c0_12 = arith.constant 0 : index
    %21 = vector.load %arg3[%c0_11, %c0_12] : memref<4x1xf32, #tpu.memory_space<vmem>>, vector<4x1xf32>
    %22 = arith.mulf %9, %20 : vector<4x1xf32>
    %23 = arith.subf %21, %22 : vector<4x1xf32>
    %24 = vector.shape_cast %20 : vector<4x1xf32> to vector<1x4x1xf32>
    %25 = vector.broadcast %24 : vector<1x4x1xf32> to vector<2x4x256xf32>
    %26 = arith.mulf %0, %25 : vector<2x4x256xf32>
    %27 = vector.shape_cast %23 : vector<4x1xf32> to vector<1x4x1xf32>
    %28 = vector.broadcast %27 : vector<1x4x1xf32> to vector<2x4x256xf32>
    %29 = arith.addf %26, %28 : vector<2x4x256xf32>
    %c0_13 = arith.constant 0 : index
    %c0_14 = arith.constant 0 : index
    %c0_15 = arith.constant 0 : index
    %30 = vector.load %arg6[%c0_13, %c0_14, %c0_15] : memref<2x4x256xf32, #tpu.memory_space<vmem>>, vector<2x4x256xf32>
    tpu.vector_store %arg6[%c0_13, %c0_14, %c0_15], %29 {strides = array<i32>} : memref<2x4x256xf32, #tpu.memory_space<vmem>>, vector<2x4x256xf32>,
    %c0_16 = arith.constant 0 : index
    %c0_17 = arith.constant 0 : index
    %31 = vector.load %arg4[%c0_16, %c0_17] : memref<4x1xf32, #tpu.memory_space<vmem>>, vector<4x1xf32>
    %cst_18 = arith.constant 0.899999976 : f32
    %32 = vector.broadcast %cst_18 : f32 to vector<4x1xf32>
    %33 = arith.mulf %32, %31 : vector<4x1xf32>
    %cst_19 = arith.constant 1.000000e-01 : f32
    %34 = vector.broadcast %cst_19 : f32 to vector<4x1xf32>
    %35 = arith.mulf %34, %9 : vector<4x1xf32>
    %36 = arith.addf %33, %35 : vector<4x1xf32>
    %c0_20 = arith.constant 0 : index
    %c0_21 = arith.constant 0 : index
    %37 = vector.load %arg7[%c0_20, %c0_21] : memref<4x1xf32, #tpu.memory_space<vmem>>, vector<4x1xf32>
    tpu.vector_store %arg7[%c0_20, %c0_21], %36 {strides = array<i32>} : memref<4x1xf32, #tpu.memory_space<vmem>>, vector<4x1xf32>,
    %c0_22 = arith.constant 0 : index
    %c0_23 = arith.constant 0 : index
    %38 = vector.load %arg5[%c0_22, %c0_23] : memref<4x1xf32, #tpu.memory_space<vmem>>, vector<4x1xf32>
    %cst_24 = arith.constant 0.899999976 : f32
    %39 = vector.broadcast %cst_24 : f32 to vector<4x1xf32>
    %40 = arith.mulf %39, %38 : vector<4x1xf32>
    %cst_25 = arith.constant 1.00195694 : f32
    %41 = vector.broadcast %cst_25 : f32 to vector<4x1xf32>
    %42 = arith.mulf %15, %41 : vector<4x1xf32>
    %cst_26 = arith.constant 1.000000e-01 : f32
    %43 = vector.broadcast %cst_26 : f32 to vector<4x1xf32>
    %44 = arith.mulf %43, %42 : vector<4x1xf32>
    %45 = arith.addf %40, %44 : vector<4x1xf32>
    %c0_27 = arith.constant 0 : index
    %c0_28 = arith.constant 0 : index
    %46 = vector.load %arg8[%c0_27, %c0_28] : memref<4x1xf32, #tpu.memory_space<vmem>>, vector<4x1xf32>
    tpu.vector_store %arg8[%c0_27, %c0_28], %45 {strides = array<i32>} : memref<4x1xf32, #tpu.memory_space<vmem>>, vector<4x1xf32>,
    return
  }
  func.func @transform_0(%arg0: i32) -> (i32, i32, i32) {
    %c0_i32 = arith.constant 0 : i32
    %c0_i32_0 = arith.constant 0 : i32
    %c0_i32_1 = arith.constant 0 : i32
    return %c0_i32, %arg0, %c0_i32_0 : i32, i32, i32
  }
  func.func @transform_1(%arg0: i32) -> (i32, i32) {
    %c0_i32 = arith.constant 0 : i32
    %c0_i32_0 = arith.constant 0 : i32
    return %arg0, %c0_i32 : i32, i32
  }
  func.func @transform_2(%arg0: i32) -> (i32, i32) {
    %c0_i32 = arith.constant 0 : i32
    %c0_i32_0 = arith.constant 0 : i32
    return %arg0, %c0_i32 : i32, i32
  }
  func.func @transform_3(%arg0: i32) -> (i32, i32) {
    %c0_i32 = arith.constant 0 : i32
    %c0_i32_0 = arith.constant 0 : i32
    return %arg0, %c0_i32 : i32, i32
  }
  func.func @transform_4(%arg0: i32) -> (i32, i32) {
    %c0_i32 = arith.constant 0 : i32
    %c0_i32_0 = arith.constant 0 : i32
    return %arg0, %c0_i32 : i32, i32
  }
  func.func @transform_5(%arg0: i32) -> (i32, i32, i32) {
    %c0_i32 = arith.constant 0 : i32
    %c0_i32_0 = arith.constant 0 : i32
    %c0_i32_1 = arith.constant 0 : i32
    return %c0_i32, %arg0, %c0_i32_0 : i32, i32, i32
  }
  func.func @transform_6(%arg0: i32) -> (i32, i32) {
    %c0_i32 = arith.constant 0 : i32
    %c0_i32_0 = arith.constant 0 : i32
    return %arg0, %c0_i32 : i32, i32
  }
  func.func @transform_7(%arg0: i32) -> (i32, i32) {
    %c0_i32 = arith.constant 0 : i32
    %c0_i32_0 = arith.constant 0 : i32
    return %arg0, %c0_i32 : i32, i32
  }
}

</mosaic_0001>

<bundles_post_ra>
// kernel: tpu_custom_call.1
= control target key start
LH: loop header
LB: loop body
LE: loop exit
PB: predicated region body
PF: predicated region fallthrough
CT: control target
= control target key end

     0   :  { %13 = vsyncpa [#allocation3], 0  ;;  %s356_s0 = inlined_call_operand.hbm [shape: f32[2,4,256], index: 0, kind: input, shape index: {}]   ;;  %s357_s1 = inlined_call_operand.vmem [shape: f32[4,1], index: 1, kind: input, shape index: {}]   ;;  %s358_s2 = inlined_call_operand.vmem [shape: f32[4,1], index: 2, kind: input, shape index: {}]   ;;  %s359_s3 = inlined_call_operand.vmem [shape: f32[4,1], index: 3, kind: input, shape index: {}]   ;;  %s360_s4 = inlined_call_operand.vmem [shape: f32[4,1], index: 4, kind: input, shape index: {}]   ;;  %s361_s5 = inlined_call_operand.hbm [shape: f32[2,4,256], index: 5, kind: output, shape index: {0}]   ;;  %s362_s6 = inlined_call_operand.vmem [shape: f32[4,1], index: 6, kind: output, shape index: {1}]   ;;  %s363_s7 = inlined_call_operand.vmem [shape: f32[4,1], index: 7, kind: output, shape index: {2}]  }
   0x1   :  { %14 = vsyncpa [#allocation4], 0  ;;  %s19_s26 = sshll.u32 %s356_s0, 4  ;;  %s253_s27 = smov [#allocation2]   ;;  %s20_s26 = int_to_ptr.hbm [resolvable:$true] %s19_s26 }
   0x2   :  { %s21_s28 = sshll.u32 %s253_s27, 4  ;;  %s254_s29 = smov 128   ;;  %s22_s28 = int_to_ptr.vmem [resolvable:$true] %s21_s28 }
   0x3   :  { %s255_s30 = smov 8  }
   0x4   :  { %27 = dma.hbm_to_vmem [thread:$0]  %s20_s26, 256, %s22_s28, [#allocation3], %s254_s29, %s254_s29, %s255_s30  }
   0x5   :  { %249 = dma.done.wait [#allocation3], 256  }
   0x6   :  { %250 = vsyncadd [#allocation3], 4294967040  ;;  %v306_v0 = vld [vmem:[#allocation2] sm:$0xff]  ;;  %v308_v1 = vld [vmem:[#allocation2 + $0x8] sm:$0xff]  ;;  %vm55_vm0 = vcmask 1043456   ;;  %v256_v24 = vmov 512.0  }
   0x7   :  { %44 = vst [vmem:[#allocation1] ss:$2 sm:$0xff] %v306_v0  ;;  %v66_v2 = vmul.f32 %v306_v0, %v306_v0  ;;  %v67_v3 = vmul.f32 %v308_v1, %v308_v1  ;;  %197 = vrcp.f32 %v256_v24  ;;  %v257_v30 = vmov 0   ;;  %v149_v36 = vld [vmem:[%s359_s3] sm:$0xf]  ;;  %s167_s18 = sshll.u32 %s361_s5, 4  ;;  %s168_s18 = int_to_ptr.hbm [resolvable:$true] %s167_s18 }
   0x8   :  { %48 = vst [vmem:[#allocation1 + $0x10] ss:$2 sm:$0xff] %v308_v1  ;;  %195 = vset.pattern.permute.xlu2 %v257_v30  ;;  %196 = vset.pattern.permute.xlu0 %v257_v30  ;;  %v150_v39 = vmul.f32 0.9, %v149_v36  ;;  %vm153_vm2 = vcmask 3072  }
   0x9   :  { %v155_v50 = vld [vmem:[%s360_s4] sm:$0xf] }
   0xa   :  { %v156_v52 = vmul.f32 0.9, %v155_v50  ;;  %v120_v63 = vld [vmem:[%s357_s1] sm:$0xf]  ;;  %s259_s1 = smov [#allocation5]  }
   0xd   :  { %v198_v25 = vpop.eup %197 }
   0xe   :  { %v45_v4 = vld.sshfl [vmem:[#allocation1] sm:$0xff pattern:$0x75316420]  ;;  %v46_v5 = vld.sshfl [vmem:[#allocation1 + $0x8] sm:$0xff pattern:$0x75316420]  ;;  %vm102_vm1 = vweird.f32 %v198_v25 }
   0xf   :  { %v56_v6 = vsel %vm55_vm0, %v45_v4, 0.0  ;;  %v57_v7 = vsel %vm55_vm0, %v46_v5, 0.0  ;;  %70 = vst [vmem:[#allocation1] ss:$2 sm:$0xff] %v66_v2  ;;  %v98_v26 = vmul.f32 512.0, %v198_v25 }
  0x10   :  { %v58_v8 = vadd.f32 %v57_v7, %v56_v6  ;;  %v49_v9 = vld.sshfl [vmem:[#allocation1 + $0x10] sm:$0xff pattern:$0x75316420]  ;;  %v50_v10 = vld.sshfl [vmem:[#allocation1 + $0x18] sm:$0xff pattern:$0x75316420] }
  0x11   :  { %74 = vst [vmem:[#allocation1 + $0x10] ss:$2 sm:$0xff] %v67_v3  ;;  %v61_v11 = vsel %vm55_vm0, %v49_v9, 0.0  ;;  %v62_v12 = vsel %vm55_vm0, %v50_v10, 0.0  ;;  %v99_v27 = vsub.f32 1.0, %v98_v26 }
  0x12   :  { %59 = vadd.xlane.f32.xlu0 %v58_v8  ;;  %v63_v15 = vadd.f32 %v62_v12, %v61_v11  ;;  %v122_v5 = vld [vmem:[%s358_s2] sm:$0xf]  ;;  %v258_v7 = vmov 839922192  }
  0x13   :  { %v100_v29 = vmul.f32 %v198_v25, %v99_v27  ;;  %v130_v8 = vunpack.c.l.s4 %v258_v7 }
  0x15   :  { %v101_v31 = vadd.f32 %v198_v25, %v100_v29  ;;  %v131_v10 = vunpack.c.0.s8 %v130_v8 }
  0x16   :  { %v71_v13 = vld.sshfl [vmem:[#allocation1] sm:$0xff pattern:$0x75316420]  ;;  %v72_v14 = vld.sshfl [vmem:[#allocation1 + $0x8] sm:$0xff pattern:$0x75316420] }
  0x17   :  { %v81_v16 = vsel %vm55_vm0, %v71_v13, 0.0  ;;  %v82_v17 = vsel %vm55_vm0, %v72_v14, 0.0  ;;  %v103_v35 = vsel %vm102_vm1, %v198_v25, %v101_v31 }
  0x18   :  { %v83_v18 = vadd.f32 %v82_v17, %v81_v16  ;;  %v75_v19 = vld.sshfl [vmem:[#allocation1 + $0x10] sm:$0xff pattern:$0x75316420]  ;;  %v76_v20 = vld.sshfl [vmem:[#allocation1 + $0x18] sm:$0xff pattern:$0x75316420] }
  0x19   :  { %v86_v21 = vsel %vm55_vm0, %v75_v19, 0.0  ;;  %v87_v22 = vsel %vm55_vm0, %v76_v20, 0.0 }
  0x1a   :  { %84 = vadd.xlane.f32.xlu1 %v83_v18  ;;  %64 = vadd.xlane.f32.xlu0 %v63_v15  ;;  %v88_v23 = vadd.f32 %v87_v22, %v86_v21 }
  0x22   :  { %89 = vadd.xlane.f32.xlu1 %v88_v23 }
  0x85   :  { %v60_v28 = vpop.xlane.xlu0 %59 }
  0x86   :  { %v91_v34 = vsel %vm55_vm0, %v60_v28, 0.0 }
  0x8d   :  { %v85_v32 = vpop.xlane.xlu1 %84  ;;  %v65_v33 = vpop.xlane.xlu0 %64 }
  0x8e   :  { %v92_v37 = vsel %vm55_vm0, %v65_v33, 0.0  ;;  %v94_v44 = vsel %vm55_vm0, %v85_v32, 0.0 }
  0x8f   :  { %v93_v38 = vadd.f32 %v92_v37, %v91_v34 }
  0x91   :  { %v104_v40 = vmul.f32 %v103_v35, %v93_v38 }
  0x93   :  { %v151_v41 = vmul.f32 0.1, %v104_v40  ;;  %v106_v48 = vmul.f32 %v104_v40, %v104_v40 }
  0x95   :  { %v152_v42 = vadd.f32 %v151_v41, %v150_v39  ;;  %v90_v43 = vpop.xlane.xlu1 %89 }
  0x96   :  { %v95_v45 = vsel %vm55_vm0, %v90_v43, 0.0 }
  0x97   :  { %154 = vst.msk [vmem:[%s362_s6] sm:$0xf] %vm153_vm2, %v152_v42  ;;  %v96_v46 = vadd.f32 %v95_v45, %v94_v44 }
  0x99   :  { %v105_v47 = vmul.f32 %v103_v35, %v96_v46 }
  0x9b   :  { %v107_v49 = vsub.f32 %v105_v47, %v106_v48 }
  0x9d   :  { %v108_v51 = vmax.f32 %v107_v49, 0.0 }
  0x9f   :  { %v109_v53 = vadd.f32 1e-05, %v108_v51  ;;  %v157_v54 = vmul.f32 1.0019569, %v108_v51 }
  0xa1   :  { %199 = vrsqrt.f32 %v109_v53  ;;  %v158_v55 = vmul.f32 0.1, %v157_v54  ;;  %vm116_vm4 = vweird.f32 %v109_v53 }
  0xa3   :  { %v159_v56 = vadd.f32 %v158_v55, %v156_v52 }
  0xa5   :  { %160 = vst.msk [vmem:[%s363_s7] sm:$0xf] %vm153_vm2, %v159_v56  ;;  %s165_s7 = sshll.u32 %s259_s1, 4  ;;  %s166_s7 = int_to_ptr.vmem [resolvable:$true] %s165_s7 }
  0xa7   :  { %v200_v57 = vpop.eup %199 }
  0xa8   :  { %v111_v58 = vmul.f32 %v200_v57, %v109_v53  ;;  %vm117_vm3 = vweird.f32 %v200_v57 }
  0xa9   :  { %vm118_vm5 = vmor %vm116_vm4, %vm117_vm3 }
  0xaa   :  { %v112_v59 = vmul.f32 %v200_v57, %v111_v58 }
  0xac   :  { %v113_v60 = vmul.f32 0.5, %v112_v59 }
  0xae   :  { %v114_v61 = vsub.f32 1.5, %v113_v60 }
  0xb0   :  { %v115_v62 = vmul.f32 %v200_v57, %v114_v61 }
  0xb2   :  { %v119_v2 = vsel %vm118_vm5, %v200_v57, %v115_v62 }
  0xb3   :  { %v121_v3 = vmul.f32 %v120_v63, %v119_v2 }
  0xb5   :  { %127 = vperm.xlu2 %195, %v121_v3   ;;  %v123_v4 = vmul.f32 %v121_v3, %v104_v40 }
  0xb7   :  { %v124_v6 = vsub.f32 %v122_v5, %v123_v4 }
  0xbd   :  { %138 = vperm.xlu2 %195, %v124_v6  }
 0x10f   :  { %v128_v9 = vpop.permute.xlu2 %127 }
 0x110   :  { %v132_v11 = vperm.slane %v128_v9, %v131_v10 }
 0x112   :  { %v134_v13 = vmul.f32 %v132_v11, %v306_v0  ;;  %v135_v14 = vmul.f32 %v132_v11, %v308_v1 }
 0x117   :  { %v139_v12 = vpop.permute.xlu2 %138 }
 0x118   :  { %v143_v15 = vperm.slane %v139_v12, %v131_v10 }
 0x11a   :  { %v145_v16 = vadd.f32 %v143_v15, %v134_v13  ;;  %v146_v17 = vadd.f32 %v143_v15, %v135_v14 }
 0x11c   :  { %147 = vst [vmem:[#allocation5] sm:$0xff] %v145_v16 }
 0x11d   :  { %148 = vst [vmem:[#allocation5 + $0x8] sm:$0xff] %v146_v17 }
 0x11e   :  { %173 = dma.vmem_to_hbm [thread:$0]  %s166_s7, 256, %s168_s18, [#allocation4], %s254_s29, %s254_s29, %s255_s30  }
 0x11f   :  { %251 = dma.done.wait [#allocation4], 256  }
 0x120   :  { %252 = vsyncadd [#allocation4], 4294967040 }
 0x121   :  { %186 = vsyncpa [#allocation3], 1 }
 0x122   :  { %187 = vsyncpa [#allocation4], 1 }

</bundles_post_ra>
